<compile_context>
chip_gen: v7x
topology: tpu7x:2x2x1
jax: 0.10.0
libtpu: 0.0.40
codegen_flags: <defaults>
</compile_context>

<pallas_src>
import functools

import jax
import jax.numpy as jnp
from jax.experimental import pallas as pl
from jax.experimental.pallas import tpu as pltpu

# ----- small, deterministic config (mirrors NewsEncoder.__init__ shapes) -----
WORD_NUM = 50        # config.word_num
EMBEDDING_DIM = 32   # config.embedding_dim
NUM_FILTERS = 16     # config.num_filters
WINDOW_SIZE = 3      # config.window_size
ATTENTION_DIM = 16   # config.attention_dim
BATCH = 12
SEQ = 8
BATCH_TILE = 8       # titles per grid step (multiple of 8 sublanes)


def news_encoder_kernel(emb_ref, wc_ref, bc_ref, wa_ref, ba_ref, q_ref, out_ref,
                        *, window, s_out):
    # emb_ref: (TB, S_pad, E)  zero-padded embedded titles for this batch tile
    # wc_ref : (W*E, F)        im2col conv weight (wc[w*E+e, f] = torch_w[f,0,w,e])
    # bc_ref : (1, F)          conv bias
    # wa_ref : (F, A)          attention Linear weight (transposed torch layout)
    # ba_ref : (1, A)          attention Linear bias
    # q_ref  : (A, 1)          attention query (column vector)
    # out_ref: (TB, F)         news representations for this batch tile
    tb = emb_ref.shape[0]
    e_dim = emb_ref.shape[2]
    n_filters = wc_ref.shape[1]

    emb = emb_ref[...]  # (TB, S_pad, E)

    # --- Conv2d as one im2col matmul (cross-correlation, like PyTorch) -------
    # Concatenate the W shifted views along the feature axis -> (TB, S_out, W*E),
    # then collapse titles into the matmul M-dim (S_out is a multiple of 8, so
    # the collapse is sublane-tile aligned).
    x_col = jnp.concatenate(
        [emb[:, w:w + s_out, :] for w in range(window)], axis=2)
    x2 = x_col.reshape(tb * s_out, window * e_dim)              # (TB*S_out, W*E)

    conv = jnp.maximum(
        jnp.dot(x2, wc_ref[...], preferred_element_type=jnp.float32)
        + bc_ref[...], 0.0)                                     # (TB*S_out, F)

    # --- additive attention over the sequence, per title ---------------------
    h = jnp.tanh(jnp.dot(conv, wa_ref[...], preferred_element_type=jnp.float32)
                 + ba_ref[...])                                 # (TB*S_out, A)
    scores = jnp.dot(h, q_ref[...],
                     preferred_element_type=jnp.float32)        # (TB*S_out, 1)
    scores = scores.reshape(tb, s_out, 1)                       # (TB, S_out, 1)

    m = jnp.max(scores, axis=1, keepdims=True)                  # (TB, 1, 1)
    e = jnp.exp(scores - m)
    denom = jnp.sum(e, axis=1, keepdims=True)                   # (TB, 1, 1)
    weights = e * pl.reciprocal(denom)                          # (TB, S_out, 1)

    conv3 = conv.reshape(tb, s_out, n_filters)                  # (TB, S_out, F)
    out_ref[...] = jnp.sum(conv3 * weights, axis=1)             # (TB, F)


def news_encoder(title, emb_table, conv_w, conv_b, att_w, att_b, att_q,
                 *, tb=BATCH_TILE):
    """Pallas implementation of NewsEncoder.forward (dropout disabled)."""
    B, S = title.shape
    E = emb_table.shape[1]
    F_ = conv_w.shape[0]
    W = conv_w.shape[2]
    A = att_w.shape[0]
    S_pad = S + 2                      # Conv2d padding=(1, 0) on the seq axis
    S_out = S_pad - W + 1

    # ---- glue: embedding lookup, padding, parameter reshapes (plain JAX) ----
    B_pad = pl.cdiv(B, tb) * tb        # pad batch; tail rows discarded below
    emb = jnp.take(emb_table, title, axis=0).astype(jnp.float32)   # (B, S, E)
    emb = jnp.pad(emb, ((0, B_pad - B), (1, 1), (0, 0)))            # (B_pad, S_pad, E)

    wc_col = jnp.transpose(conv_w[:, 0, :, :].reshape(F_, W * E))   # (W*E, F)
    bc = conv_b.reshape(1, F_)
    wa = att_w.T                                                    # (F, A)
    ba = att_b.reshape(1, A)
    q = att_q.reshape(A, 1)

    kernel = functools.partial(news_encoder_kernel, window=W, s_out=S_out)

    out = pl.pallas_call(
        kernel,
        out_shape=jax.ShapeDtypeStruct((B_pad, F_), jnp.float32),
        grid_spec=pltpu.PrefetchScalarGridSpec(
            num_scalar_prefetch=0,
            grid=(B_pad // tb,),
            in_specs=[
                pl.BlockSpec((tb, S_pad, E), lambda b: (b, 0, 0)),
                pl.BlockSpec((W * E, F_), lambda b: (0, 0)),
                pl.BlockSpec((1, F_), lambda b: (0, 0)),
                pl.BlockSpec((F_, A), lambda b: (0, 0)),
                pl.BlockSpec((1, A), lambda b: (0, 0)),
                pl.BlockSpec((A, 1), lambda b: (0, 0)),
            ],
            out_specs=pl.BlockSpec((tb, F_), lambda b: (b, 0)),
        ),
        compiler_params=pltpu.CompilerParams(
            dimension_semantics=("parallel",),
            vmem_limit_bytes=32 * 1024 * 1024,
        ),
    )(emb, wc_col, bc, wa, ba, q)
    return out[:B]  # drop padded tail titles -> (B, F)


def reference(title, emb_table, conv_w, conv_b, att_w, att_b, att_q):
    """Pure-JAX reference mirroring the PyTorch forward (dropout = identity)."""
    emb = jnp.take(emb_table, title, axis=0)                 # (B, S, E)
    x = emb[:, None, :, :]                                   # NCHW (B, 1, S, E)
    y = jax.lax.conv_general_dilated(
        x, conv_w, window_strides=(1, 1), padding=((1, 1), (0, 0)),
        dimension_numbers=("NCHW", "OIHW", "NCHW"))
    y = y + conv_b[None, :, None, None]
    y = jnp.squeeze(y, axis=3)                               # (B, F, S_out)
    y = jnp.maximum(y, 0.0)
    c = jnp.transpose(y, (0, 2, 1))                          # (B, S_out, F)
    h = jnp.tanh(c @ att_w.T + att_b)
    s = h @ att_q
    w = jax.nn.softmax(s, axis=1)
    return jnp.einsum("bs,bsf->bf", w, c)


if __name__ == "__main__":
    key = jax.random.PRNGKey(0)
    ks = jax.random.split(key, 7)

    emb_table = 0.1 * jax.random.normal(ks[0], (WORD_NUM, EMBEDDING_DIM), jnp.float32)
    emb_table = emb_table.at[0].set(0.0)  # padding_idx=0
    conv_w = 0.1 * jax.random.normal(
        ks[1], (NUM_FILTERS, 1, WINDOW_SIZE, EMBEDDING_DIM), jnp.float32)
    conv_b = 0.1 * jax.random.normal(ks[2], (NUM_FILTERS,), jnp.float32)
    att_w = 0.1 * jax.random.normal(ks[3], (ATTENTION_DIM, NUM_FILTERS), jnp.float32)
    att_b = 0.1 * jax.random.normal(ks[4], (ATTENTION_DIM,), jnp.float32)
    att_q = jax.random.uniform(ks[5], (ATTENTION_DIM,), jnp.float32, -0.1, 0.1)

    title = jax.random.randint(ks[6], (BATCH, SEQ), 0, WORD_NUM)

    out = news_encoder(title, emb_table, conv_w, conv_b, att_w, att_b, att_q)
    out = jax.block_until_ready(out)

    ref = reference(title, emb_table, conv_w, conv_b, att_w, att_b, att_q)
    assert out.shape == (BATCH, NUM_FILTERS)
    assert jnp.allclose(out, ref, rtol=1e-5, atol=1e-5), (out, ref)

    print("KERNEL_OK")
</pallas_src>

<mosaic_0001>
module attributes {stable_mosaic.version = 11 : i64} {
  func.func @news_encoder_kernel(%arg0: i32, %arg1: memref<8x10x32xf32, #tpu.memory_space<vmem>>, %arg2: memref<96x16xf32, #tpu.memory_space<vmem>>, %arg3: memref<1x16xf32, #tpu.memory_space<vmem>>, %arg4: memref<16x16xf32, #tpu.memory_space<vmem>>, %arg5: memref<1x16xf32, #tpu.memory_space<vmem>>, %arg6: memref<16x1xf32, #tpu.memory_space<vmem>>, %arg7: memref<8x16xf32, #tpu.memory_space<vmem>>) attributes {dimension_semantics = [#tpu.dimension_semantics<parallel>], iteration_bounds = array<i64: 2>, scalar_prefetch = 0 : i64, scratch_operands = 0 : i64, tpu.core_type = #tpu.core_type<tc>, window_params = [{transform_indices = @transform_0, window_bounds = array<i64: 8, 10, 32>}, {pipeline_mode = #tpu.pipeline_mode<synchronous>, transform_indices = @transform_1, window_bounds = array<i64: 96, 16>}, {pipeline_mode = #tpu.pipeline_mode<synchronous>, transform_indices = @transform_2, window_bounds = array<i64: 1, 16>}, {pipeline_mode = #tpu.pipeline_mode<synchronous>, transform_indices = @transform_3, window_bounds = array<i64: 16, 16>}, {pipeline_mode = #tpu.pipeline_mode<synchronous>, transform_indices = @transform_4, window_bounds = array<i64: 1, 16>}, {pipeline_mode = #tpu.pipeline_mode<synchronous>, transform_indices = @transform_5, window_bounds = array<i64: 16, 1>}, {transform_indices = @transform_6, window_bounds = array<i64: 8, 16>}]} {
    %c0 = arith.constant 0 : index
    %c0_0 = arith.constant 0 : index
    %c0_1 = arith.constant 0 : index
    %0 = vector.load %arg1[%c0, %c0_0, %c0_1] : memref<8x10x32xf32, #tpu.memory_space<vmem>>, vector<8x10x32xf32>
    %1 = vector.extract_strided_slice %0 {offsets = [0, 0, 0], sizes = [8, 8, 32], strides = [1, 1, 1]} : vector<8x10x32xf32> to vector<8x8x32xf32>
    %2 = vector.extract_strided_slice %0 {offsets = [0, 1, 0], sizes = [8, 8, 32], strides = [1, 1, 1]} : vector<8x10x32xf32> to vector<8x8x32xf32>
    %3 = vector.extract_strided_slice %0 {offsets = [0, 2, 0], sizes = [8, 8, 32], strides = [1, 1, 1]} : vector<8x10x32xf32> to vector<8x8x32xf32>
    %4 = tpu.concatenate %1, %2, %3 in 2 : vector<8x8x32xf32>, vector<8x8x32xf32>, vector<8x8x32xf32> -> vector<8x8x96xf32>
    %5 = vector.shape_cast %4 : vector<8x8x96xf32> to vector<64x96xf32>
    %c0_2 = arith.constant 0 : index
    %c0_3 = arith.constant 0 : index
    %6 = vector.load %arg2[%c0_2, %c0_3] : memref<96x16xf32, #tpu.memory_space<vmem>>, vector<96x16xf32>
    %cst = arith.constant dense<0.000000e+00> : vector<64x16xf32>
    %7 = tpu.matmul %5, %6, %cst {dimension_numbers = #tpu.dot_dimension_numbers<[1], [0], [0], [1], [0, 0, 1, 1], [], []>} : vector<64x96xf32>, vector<96x16xf32>, vector<64x16xf32> -> vector<64x16xf32>
    %c0_4 = arith.constant 0 : index
    %c0_5 = arith.constant 0 : index
    %8 = vector.load %arg3[%c0_4, %c0_5] : memref<1x16xf32, #tpu.memory_space<vmem>>, vector<1x16xf32>
    %9 = vector.broadcast %8 : vector<1x16xf32> to vector<64x16xf32>
    %10 = arith.addf %7, %9 : vector<64x16xf32>
    %cst_6 = arith.constant 0.000000e+00 : f32
    %11 = vector.broadcast %cst_6 : f32 to vector<64x16xf32>
    %12 = arith.maximumf %10, %11 : vector<64x16xf32>
    %c0_7 = arith.constant 0 : index
    %c0_8 = arith.constant 0 : index
    %13 = vector.load %arg4[%c0_7, %c0_8] : memref<16x16xf32, #tpu.memory_space<vmem>>, vector<16x16xf32>
    %cst_9 = arith.constant dense<0.000000e+00> : vector<64x16xf32>
    %14 = tpu.matmul %12, %13, %cst_9 {dimension_numbers = #tpu.dot_dimension_numbers<[1], [0], [0], [1], [0, 0, 1, 1], [], []>} : vector<64x16xf32>, vector<16x16xf32>, vector<64x16xf32> -> vector<64x16xf32>
    %c0_10 = arith.constant 0 : index
    %c0_11 = arith.constant 0 : index
    %15 = vector.load %arg5[%c0_10, %c0_11] : memref<1x16xf32, #tpu.memory_space<vmem>>, vector<1x16xf32>
    %16 = vector.broadcast %15 : vector<1x16xf32> to vector<64x16xf32>
    %17 = arith.addf %14, %16 : vector<64x16xf32>
    %18 = math.tanh %17 : vector<64x16xf32>
    %c0_12 = arith.constant 0 : index
    %c0_13 = arith.constant 0 : index
    %19 = vector.load %arg6[%c0_12, %c0_13] : memref<16x1xf32, #tpu.memory_space<vmem>>, vector<16x1xf32>
    %cst_14 = arith.constant dense<0.000000e+00> : vector<64x1xf32>
    %20 = tpu.matmul %18, %19, %cst_14 {dimension_numbers = #tpu.dot_dimension_numbers<[1], [0], [0], [1], [0, 0, 1, 1], [], []>} : vector<64x16xf32>, vector<16x1xf32>, vector<64x1xf32> -> vector<64x1xf32>
    %21 = vector.shape_cast %20 : vector<64x1xf32> to vector<8x8x1xf32>
    %cst_15 = arith.constant dense<0xFF800000> : vector<8x1xf32>
    %22 = vector.multi_reduction <maximumf>, %21, %cst_15 [1] : vector<8x8x1xf32> to vector<8x1xf32>
    %23 = vector.shape_cast %22 : vector<8x1xf32> to vector<8x1x1xf32>
    %24 = vector.broadcast %23 : vector<8x1x1xf32> to vector<8x8x1xf32>
    %25 = arith.subf %21, %24 : vector<8x8x1xf32>
    %26 = math.exp %25 : vector<8x8x1xf32>
    %cst_16 = arith.constant dense<0.000000e+00> : vector<8x1xf32>
    %27 = vector.multi_reduction <add>, %26, %cst_16 [1] : vector<8x8x1xf32> to vector<8x1xf32>
    %28 = vector.shape_cast %27 : vector<8x1xf32> to vector<8x1x1xf32>
    %29 = tpu.reciprocal %28 : vector<8x1x1xf32> -> vector<8x1x1xf32>
    %30 = vector.broadcast %29 : vector<8x1x1xf32> to vector<8x8x1xf32>
    %31 = arith.mulf %26, %30 : vector<8x8x1xf32>
    %32 = vector.shape_cast %12 : vector<64x16xf32> to vector<8x8x16xf32>
    %33 = vector.broadcast %31 : vector<8x8x1xf32> to vector<8x8x16xf32>
    %34 = arith.mulf %32, %33 : vector<8x8x16xf32>
    %cst_17 = arith.constant dense<0.000000e+00> : vector<8x16xf32>
    %35 = vector.multi_reduction <add>, %34, %cst_17 [1] : vector<8x8x16xf32> to vector<8x16xf32>
    %c0_18 = arith.constant 0 : index
    %c0_19 = arith.constant 0 : index
    %36 = vector.load %arg7[%c0_18, %c0_19] : memref<8x16xf32, #tpu.memory_space<vmem>>, vector<8x16xf32>
    tpu.vector_store %arg7[%c0_18, %c0_19], %35 {strides = array<i32>} : memref<8x16xf32, #tpu.memory_space<vmem>>, vector<8x16xf32>,
    return
  }
  func.func @transform_0(%arg0: i32) -> (i32, i32, i32) {
    %c0_i32 = arith.constant 0 : i32
    %c0_i32_0 = arith.constant 0 : i32
    %c0_i32_1 = arith.constant 0 : i32
    return %arg0, %c0_i32, %c0_i32_0 : i32, i32, i32
  }
  func.func @transform_1(%arg0: i32) -> (i32, i32) {
    %c0_i32 = arith.constant 0 : i32
    %c0_i32_0 = arith.constant 0 : i32
    %c0_i32_1 = arith.constant 0 : i32
    return %c0_i32, %c0_i32_0 : i32, i32
  }
  func.func @transform_2(%arg0: i32) -> (i32, i32) {
    %c0_i32 = arith.constant 0 : i32
    %c0_i32_0 = arith.constant 0 : i32
    %c0_i32_1 = arith.constant 0 : i32
    return %c0_i32, %c0_i32_0 : i32, i32
  }
  func.func @transform_3(%arg0: i32) -> (i32, i32) {
    %c0_i32 = arith.constant 0 : i32
    %c0_i32_0 = arith.constant 0 : i32
    %c0_i32_1 = arith.constant 0 : i32
    return %c0_i32, %c0_i32_0 : i32, i32
  }
  func.func @transform_4(%arg0: i32) -> (i32, i32) {
    %c0_i32 = arith.constant 0 : i32
    %c0_i32_0 = arith.constant 0 : i32
    %c0_i32_1 = arith.constant 0 : i32
    return %c0_i32, %c0_i32_0 : i32, i32
  }
  func.func @transform_5(%arg0: i32) -> (i32, i32) {
    %c0_i32 = arith.constant 0 : i32
    %c0_i32_0 = arith.constant 0 : i32
    %c0_i32_1 = arith.constant 0 : i32
    return %c0_i32, %c0_i32_0 : i32, i32
  }
  func.func @transform_6(%arg0: i32) -> (i32, i32) {
    %c0_i32 = arith.constant 0 : i32
    %c0_i32_0 = arith.constant 0 : i32
    return %arg0, %c0_i32 : i32, i32
  }
}

</mosaic_0001>

<bundles_post_ra>
// kernel: tpu_custom_call.1
= control target key start
LH: loop header
LB: loop body
LE: loop exit
PB: predicated region body
PF: predicated region fallthrough
CT: control target
= control target key end

     0   :  { %11 = vsyncpa [#allocation3], 0  ;;  %s1945_s0 = inlined_call_operand.vmem [shape: f32[16,10,32], index: 0, kind: input, shape index: {}]   ;;  %s1946_s1 = inlined_call_operand.vmem [shape: f32[96,16], index: 1, kind: input, shape index: {}]   ;;  %s1947_s2 = inlined_call_operand.vmem [shape: f32[1,16], index: 2, kind: input, shape index: {}]   ;;  %s1948_s3 = inlined_call_operand.vmem [shape: f32[16,16], index: 3, kind: input, shape index: {}]   ;;  %s1949_s4 = inlined_call_operand.vmem [shape: f32[1,16], index: 4, kind: input, shape index: {}]   ;;  %s1950_s5 = inlined_call_operand.vmem [shape: f32[16,1], index: 5, kind: input, shape index: {}]   ;;  %s1951_s6 = inlined_call_operand.hbm [shape: f32[16,16], index: 6, kind: output, shape index: {}]  }
   0x1   :  { %13 = vsyncpa [#allocation3 + $0x1], 0  ;;  %s1566_s21 = smov 0   ;;  %s1568_s22 = smov 0  }
   0x2   :  { %s1570_s23 = smov 0   ;;  %s1572_s24 = smov 0  }
   0x3 LB: > { %s1587_s25 = sadd.s32 4294967295, %s1525_s24   ;;  %s1192_s26 = sadd.s32 4294967294, %s1525_s24   ;;  %s1525_s24 = sphi %s1572_s24, %s1957_s24   ;;  %s1521_s23 = sphi %s1570_s23, %s1956_s23   ;;  %s1517_s22 = sphi %s1568_s22, %s1955_s22   ;;  %s1513_s21 = sphi %s1566_s21, %s1954_s21  }
   0x4   : > { %s1591_s27 = sadd.s32 1, %s1525_s24   ;;  %s157_s28 = sadd.s32 1, %s1521_s23 }
   0x5   : > { %s154_s29 = ssub.s32 %s1525_s24, %s1591_s27  ;;  %p167_p0 = scmp.ne.s32.totalorder %s1521_s23, %s1517_s22 }
   0x6   : > { %p155_p1 = scmp.eq.s32.totalorder %s154_s29, 0  ;;  %p168_p2 = scmp.eq.s32.totalorder %s1587_s25, 1 }
   0x7   : > { %p173_p3 = scmp.ne.s32.totalorder %s1517_s22, %s1513_s21  ;;  %p174_p4 = scmp.eq.s32.totalorder %s1192_s26, 1 }
   0x8   : > { %s1602_s30 = scalar_select %p155_p1, %s1521_s23, %s157_s28  }
   0x9   : > { %p1604_p5 = por %p168_p2, %p167_p0  ;;  %p1608_p6 = por %p174_p4, %p173_p3 }
   0xa   : > { %p1195_p7 = scmp.ge.s32.totalorder %s1525_s24, 1  ;;  %p217_p8 = scmp.lt.s32.totalorder %s1525_s24, 3 }
   0xc   : > { %p218_p9 = pnand %p1195_p7, %p217_p8 }
   0xd   : > { %s1197_s9 = sshll.u32 (!%p218_p9), %s1587_s25, 3  ;;  %v403_v0 = vld [vmem:[%s1946_s1] sm:$0xff] (!%p218_p9)  ;;  %v404_v1 = vld [vmem:[%s1946_s1 + $0x8] sm:$0xff] (!%p218_p9)  ;;  %v405_v3 = vld [vmem:[%s1946_s1 + $0x10] sm:$0xff] (!%p218_p9)  ;;  %vm336_vm0 = vcmask (!%p218_p9), 1045504   ;;  %vm287_vm1 = vcmask (!%p218_p9), 1046528  }
   0xe   : > { %221 = sbr.rel (%p218_p9) target bundleno = 1044 (0x414), region = 44  ;;  %p249_p10 = scmp.lt.s32.totalorder (!%p218_p9), %s1197_s9, 15  ;;  %v1339_v2 = vpack.c.bf16 (!%p218_p9), %v404_v1, %v403_v0  ;;  %v406_v4 = vld [vmem:[%s1946_s1 + $0x18] sm:$0xff] (!%p218_p9)  ;;  %v407_v6 = vld [vmem:[%s1946_s1 + $0x20] sm:$0xff] (!%p218_p9)  ;;  %v408_v7 = vld [vmem:[%s1946_s1 + $0x28] sm:$0xff] (!%p218_p9)  ;;  %vm385_vm2 = vcmask (!%p218_p9), 261120  }
   0xf   : > { %v1343_v5 = vpack.c.bf16 (!%p218_p9), %v406_v4, %v405_v3  ;;  %v409_v8 = vld [vmem:[%s1946_s1 + $0x30] sm:$0xff] (!%p218_p9)  ;;  %v410_v9 = vld [vmem:[%s1946_s1 + $0x38] sm:$0xff] (!%p218_p9)  ;;  %v1347_v10 = vpack.c.bf16 (!%p218_p9), %v408_v7, %v407_v6  ;;  %v411_v20 = vld [vmem:[%s1946_s1 + $0x40] sm:$0xff] (!%p218_p9)  ;;  %s1527_s19 = smov (!%p218_p9), 64   ;;  %s1528_s20 = smov (!%p218_p9), 32   ;;  %vm394_vm3 = vcmask (!%p218_p9), 523264  }
  0x10   : > { %1340 = vmatprep.subr.bf16.mxu0 (!%p218_p9), %v1339_v2  ;;  %v1351_v14 = vpack.c.bf16 (!%p218_p9), %v410_v9, %v409_v8  ;;  %v412_v31 = vld [vmem:[%s1946_s1 + $0x48] sm:$0xff] (!%p218_p9)  ;;  %v413_v39 = vld [vmem:[%s1946_s1 + $0x50] sm:$0xff] (!%p218_p9)  ;;  %v414_v40 = vld [vmem:[%s1946_s1 + $0x58] sm:$0xff] (!%p218_p9)  ;;  %vm422_vm4 = vcmask (!%p218_p9), 785408   ;;  %vm569_vm5 = vcmask (!%p218_p9), 130048   ;;  %vm838_vm6 = vcmask (!%p218_p9), 7168  }
  0x11   : > { %1342 = vmatpush3.bf16.msra.mxu0 (!%p218_p9), %v1339_v2  ;;  %v1355_v38 = vpack.c.bf16 (!%p218_p9), %v412_v31, %v411_v20  ;;  %v1359_v51 = vpack.c.bf16 (!%p218_p9), %v414_v40, %v413_v39  ;;  %vm1103_vm7 = vcmask (!%p218_p9), 1041409   ;;  %s245_s28 = sand.u32 (!%p218_p9), 1, %s1517_s22   ;;  %vm1105_vm8 = vcmask (!%p218_p9), 1042434   ;;  %s1227_s10 = sshll.u32 (!%p218_p9), %s1587_s25, 7 }
  0x12   : > { %1344 = vmatprep.subr.bf16.mxu0 (!%p218_p9), %v1343_v5  ;;  %s1196_s29 = sshll.u32 (!%p218_p9), %s245_s28, 3  ;;  %vm1107_vm9 = vcmask (!%p218_p9), 1043459   ;;  %vm1109_vm10 = vcmask (!%p218_p9), 1044484   ;;  %vm1111_vm11 = vcmask (!%p218_p9), 1045509   ;;  %vm1113_vm12 = vcmask (!%p218_p9), 1046534   ;;  %s1120_s25 = scalar_lea.sflag (!%p218_p9), [#allocation3], %s245_s28 }
  0x13   : > { %s247_s11 = scalar_lea.vmem (!%p218_p9), [#allocation2], %s1196_s29  ;;  %vm1115_vm13 = vcmask (!%p218_p9), 1047559   ;;  %s1530_s16 = smov (!%p218_p9), [#allocation2]  }
  0x14   : > { %s1467_s17 = sshll.u32 (!%p218_p9), %s1530_s16, 4  ;;  %s1468_s17 = int_to_ptr.vmem [resolvable:$false] %s1467_s17 }
  0x15   : > { %s1959_s9 = smov (!%p249_p10, %s1197_s9), 15  ;;  %1346 = vmatpush3.bf16.msra.mxu0 %v1343_v5  ;;  %s1469_s18 = scalar_lea.vmem %s1468_s17, 256 }
  0x16   : > { %s1230_s12 = sshll.u32 %s1959_s9, 4  ;;  %1348 = vmatprep.subr.bf16.mxu0 %v1347_v10 }
  0x17   : > { %s1642_s15 = scalar_lea.vmem %s1945_s0, %s1230_s12  ;;  %s1133_s12 = sshll.u32 %s247_s11, 4  ;;  %s1902_s12 = int_to_ptr.vmem [resolvable:$true] %s1133_s12 }
  0x18   : > { %v1645_v11 = vld [vmem:[%s1642_s15] sm:$0xff]  ;;  %v256_v12 = vld [vmem:[%s1642_s15 + $0x8] sm:$0x3]  ;;  %v1649_v13 = vld [vmem:[%s1642_s15 + $0x10] sm:$0xff]  ;;  %s1463_s9 = scalar_lea.vmem %s1902_s12, 128  ;;  %p1470_p0 = scmp.lt.s32.totalorder %s1902_s12, %s1468_s17 }
  0x19   : > { %v337_v15 = vrot.slane %v1645_v11, 2  ;;  %v338_v16 = vrot.slane %v256_v12, 2  ;;  %v288_v17 = vrot.slane %v1645_v11, 1  ;;  %v289_v18 = vrot.slane %v256_v12, 1  ;;  %v258_v19 = vld [vmem:[%s1642_s15 + $0x18] sm:$0x3]  ;;  %1350 = vmatpush3.bf16.msra.mxu0 %v1347_v10  ;;  %p1464_p11 = scmp.ne.s32.totalorder %s1902_s12, %s1463_s9  ;;  %p1471_p1 = scmp.lt.s32.totalorder %s1469_s18, %s1463_s9 }
  0x1a   : > { %v340_v21 = vrot.slane %v1649_v13, 2  ;;  %v341_v22 = vrot.slane %v258_v19, 2  ;;  %v291_v23 = vrot.slane %v1649_v13, 1  ;;  %v292_v24 = vrot.slane %v258_v19, 1  ;;  %v1660_v25 = vld [vmem:[%s1642_s15 + $0x30] sm:$0xff]  ;;  %v1663_v26 = vld [vmem:[%s1642_s15 + $0x20] sm:$0xff]  ;;  %1352 = vmatprep.subr.bf16.mxu0 %v1351_v14 }
  0x1b   : > { %v339_v27 = vsel %vm336_vm0, %v337_v15, %v338_v16  ;;  %v290_v28 = vsel %vm287_vm1, %v288_v17, %v289_v18  ;;  %v262_v29 = vld [vmem:[%s1642_s15 + $0x38] sm:$0x3]  ;;  %v260_v30 = vld [vmem:[%s1642_s15 + $0x28] sm:$0x3]  ;;  %v297_v32 = vrot.slane %v1660_v25, 1  ;;  %v294_v33 = vrot.slane %v1663_v26, 1  ;;  %p1465_p12 = pnand %p1464_p11, %p1604_p5  ;;  %p1472_p2 = por %p1471_p1, %p1470_p0 }
  0x1c   : > { %361 = vrot.lane.b32.xlu1 %v339_v27, %s1527_s19  ;;  %312 = vrot.lane.b32.xlu0 %v290_v28, %s1528_s20  ;;  %v342_v34 = vsel %vm336_vm0, %v340_v21, %v341_v22  ;;  %v293_v35 = vsel %vm287_vm1, %v291_v23, %v292_v24  ;;  %v298_v36 = vrot.slane %v262_v29, 1  ;;  %v295_v37 = vrot.slane %v260_v30, 1  ;;  %v1691_v47 = vld [vmem:[%s1642_s15 + $0x50] sm:$0xff]  ;;  %v266_v48 = vld [vmem:[%s1642_s15 + $0x58] sm:$0x3] }
  0x1d   : > { %v346_v41 = vrot.slane %v1660_v25, 2  ;;  %v347_v42 = vrot.slane %v262_v29, 2  ;;  %v343_v45 = vrot.slane %v1663_v26, 2  ;;  %v344_v46 = vrot.slane %v260_v30, 2  ;;  %1354 = vmatpush3.bf16.msra.mxu0 %v1351_v14  ;;  %v1695_v49 = vld [vmem:[%s1642_s15 + $0x40] sm:$0xff]  ;;  %v1711_v0 = vld [vmem:[%s1642_s15 + $0x70] sm:$0xff]  ;;  %p1466_p13 = pneg %p1465_p12 }
  0x1e   : > { %v299_v43 = vsel %vm287_vm1, %v297_v32, %v298_v36  ;;  %v296_v44 = vsel %vm287_vm1, %v294_v33, %v295_v37  ;;  %v264_v50 = vld [vmem:[%s1642_s15 + $0x48] sm:$0x3]  ;;  %1356 = vmatprep.subr.bf16.mxu0 %v1355_v38  ;;  %v303_v52 = vrot.slane %v1691_v47, 1  ;;  %v304_v53 = vrot.slane %v266_v48, 1  ;;  %v270_v1 = vld [vmem:[%s1642_s15 + $0x78] sm:$0x3] }
  0x1f   : > { %v348_v54 = vsel %vm336_vm0, %v346_v41, %v347_v42  ;;  %v345_v55 = vsel %vm336_vm0, %v343_v45, %v344_v46  ;;  %v300_v56 = vrot.slane %v1695_v49, 1  ;;  %v301_v57 = vrot.slane %v264_v50, 1  ;;  %v267_v2 = vld [vmem:[%s1642_s15 + $0x60] sm:$0xff]  ;;  %v268_v3 = vld [vmem:[%s1642_s15 + $0x68] sm:$0x3]  ;;  %s1900_s15 = scalar_lea.hbm %s1951_s6, %s1227_s10  ;;  %p1473_p3 = pnand %p1472_p2, %p1466_p13 }
  0x20   : > { %363 = vrot.lane.b32.xlu1 %v342_v34, %s1527_s19  ;;  %314 = vrot.lane.b32.xlu0 %v293_v35, %s1528_s20  ;;  %v305_v58 = vsel %vm287_vm1, %v303_v52, %v304_v53  ;;  %v352_v59 = vrot.slane %v1691_v47, 2  ;;  %v353_v61 = vrot.slane %v266_v48, 2  ;;  %v349_v62 = vrot.slane %v1695_v49, 2  ;;  %v1200_v53 = vld [vmem:[%s1947_s2] ss:$0 sm:$0xff] }
  0x21   : > { %1358 = vmatpush3.bf16.msra.mxu0 %v1355_v38  ;;  %v302_v60 = vsel %vm287_vm1, %v300_v56, %v301_v57  ;;  %v350_v63 = vrot.slane %v264_v50, 2  ;;  %v309_v4 = vrot.slane %v1711_v0, 1  ;;  %v310_v5 = vrot.slane %v270_v1, 1  ;;  %v560_v50 = vld [vmem:[%s1948_s3] sm:$0xff] }
  0x22   : > { %1360 = vmatprep.subr.bf16.mxu0 %v1359_v51  ;;  %v354_v6 = vsel %vm336_vm0, %v352_v59, %v353_v61  ;;  %v306_v8 = vrot.slane %v267_v2, 1  ;;  %v307_v9 = vrot.slane %v268_v3, 1  ;;  %v358_v12 = vrot.slane %v1711_v0, 2 }
  0x23   : > { %v351_v7 = vsel %vm336_vm0, %v349_v62, %v350_v63  ;;  %v311_v10 = vsel %vm287_vm1, %v309_v4, %v310_v5  ;;  %v359_v15 = vrot.slane %v270_v1, 2  ;;  %v355_v16 = vrot.slane %v267_v2, 2 }
  0x24   : > { %318 = vrot.lane.b32.xlu1 %v299_v43, %s1528_s20  ;;  %316 = vrot.lane.b32.xlu0 %v296_v44, %s1528_s20  ;;  %v308_v14 = vsel %vm287_vm1, %v306_v8, %v307_v9  ;;  %v356_v17 = vrot.slane %v268_v3, 2 }
  0x25   : > { %1362 = vmatpush3.bf16.msra.mxu0 %v1359_v51  ;;  %v360_v18 = vsel %vm336_vm0, %v358_v12, %v359_v15  ;;  %v561_v51 = vld [vmem:[%s1948_s3 + $0x8] sm:$0xff] }
  0x26   : > { %v357_v19 = vsel %vm336_vm0, %v355_v16, %v356_v17  ;;  %v1363_v52 = vpack.c.bf16 %v561_v51, %v560_v50  ;;  %v707_v16 = vld [vmem:[%s1950_s5] sm:$0xff]  ;;  %v708_v17 = vld [vmem:[%s1950_s5 + $0x8] sm:$0xff] }
  0x28   : > { %367 = vrot.lane.b32.xlu1 %v348_v54, %s1527_s19  ;;  %365 = vrot.lane.b32.xlu0 %v345_v55, %s1527_s19 }
  0x29   : > { %1364 = vmatprep.subr.bf16.mxu1 %v1363_v52 }
  0x2a   : > { %1366 = vmatpush3.bf16.msra.mxu1 %v1363_v52 }
  0x2c   : > { %322 = vrot.lane.b32.xlu1 %v305_v58, %s1528_s20  ;;  %320 = vrot.lane.b32.xlu0 %v302_v60, %s1528_s20 }
  0x30   : > { %371 = vrot.lane.b32.xlu1 %v354_v6, %s1527_s19  ;;  %369 = vrot.lane.b32.xlu0 %v351_v7, %s1527_s19 }
  0x34   : > { %326 = vrot.lane.b32.xlu1 %v311_v10, %s1528_s20  ;;  %324 = vrot.lane.b32.xlu0 %v308_v14, %s1528_s20 }
  0x38   : > { %375 = vrot.lane.b32.xlu1 %v360_v18, %s1527_s19  ;;  %373 = vrot.lane.b32.xlu0 %v357_v19, %s1527_s19  ;;  %v1367_v18 = vpack.c.bf16 %v708_v17, %v707_v16  ;;  %v1209_v19 = vld [vmem:[%s1949_s4] ss:$0 sm:$0xff] }
  0x3a   : > { %1368 = vmatprep.subr.bf16.mxu1 %v1367_v18 }
  0x8e   : > { %v362_v20 = vpop.permute.xlu1 %361  ;;  %v313_v21 = vpop.permute.xlu0 %312 }
  0x8f   : > { %v386_v22 = vsel %vm385_vm2, %v1645_v11, %v313_v21 }
  0x90   : > { %v395_v23 = vsel %vm394_vm3, %v386_v22, %v362_v20 }
  0x91   : > { %1295 = vmatprep.mubr.msk.f32.mxu0 %vm422_vm4, %v395_v23 }
  0x92   : > { %v364_v24 = vpop.permute.xlu1 %363  ;;  %v315_v27 = vpop.permute.xlu0 %314 }
  0x93   : > { %v387_v28 = vsel %vm385_vm2, %v1649_v13, %v315_v27 }
  0x94   : > { %v396_v29 = vsel %vm394_vm3, %v387_v28, %v364_v24 }
  0x95   : > { %1296 = vmatmul.mubr.msk.f32.vlgmr.msra.gmra.mrb[0].mxu0 %vm422_vm4, %v396_v29 }
  0x96   : > { %v319_v30 = vpop.permute.xlu1 %318  ;;  %v317_v31 = vpop.permute.xlu0 %316 }
  0x97   : > { %v389_v32 = vsel %vm385_vm2, %v1660_v25, %v319_v30  ;;  %v388_v11 = vsel %vm385_vm2, %v1663_v26, %v317_v31 }
  0x9a   : > { %v368_v33 = vpop.permute.xlu1 %367  ;;  %v366_v34 = vpop.permute.xlu0 %365 }
  0x9b   : > { %v398_v35 = vsel %vm394_vm3, %v389_v32, %v368_v33  ;;  %v397_v36 = vsel %vm394_vm3, %v388_v11, %v366_v34 }
  0x9c   : > { %1298 = vmatprep.mubr.msk.f32.mxu0 %vm422_vm4, %v397_v36 }
  0x9d   : > { %1299 = vmatmul.mubr.msk.f32.gmra.mrb[2].mxu0 %vm422_vm4, %v398_v35 }
  0x9e   : > { %v323_v13 = vpop.permute.xlu1 %322  ;;  %v321_v37 = vpop.permute.xlu0 %320 }
  0x9f   : > { %v391_v38 = vsel %vm385_vm2, %v1691_v47, %v323_v13  ;;  %v390_v25 = vsel %vm385_vm2, %v1695_v49, %v321_v37 }
  0xa2   : > { %v372_v39 = vpop.permute.xlu1 %371  ;;  %v370_v26 = vpop.permute.xlu0 %369 }
  0xa3   : > { %v400_v40 = vsel %vm394_vm3, %v391_v38, %v372_v39  ;;  %v399_v41 = vsel %vm394_vm3, %v390_v25, %v370_v26 }
  0xa4   : > { %1301 = vmatprep.mubr.msk.f32.mxu0 %vm422_vm4, %v399_v41 }
  0xa5   : > { %1302 = vmatmul.mubr.msk.f32.gmra.mrb[4].mxu0 %vm422_vm4, %v400_v40 }
  0xa6   : > { %v327_v42 = vpop.permute.xlu1 %326  ;;  %v325_v43 = vpop.permute.xlu0 %324 }
  0xa7   : > { %v393_v44 = vsel %vm385_vm2, %v1711_v0, %v327_v42  ;;  %v392_v45 = vsel %vm385_vm2, %v267_v2, %v325_v43  ;;  %v1529_v42 = vmov 0  }
  0xa8   : > { %1413 = vset.pattern.permute.xlu1 %v1529_v42  ;;  %1414 = vset.pattern.permute.xlu0 %v1529_v42 }
  0xaa   : > { %v376_v46 = vpop.permute.xlu1 %375  ;;  %v374_v47 = vpop.permute.xlu0 %373 }
  0xab   : > { %v402_v48 = vsel %vm394_vm3, %v393_v44, %v376_v46  ;;  %v401_v49 = vsel %vm394_vm3, %v392_v45, %v374_v47 }
  0xac   : > { %1304 = vmatprep.mubr.msk.f32.mxu0 %vm422_vm4, %v401_v49 }
  0xad   : > { %1305 = vmatmul.mubr.msk.f32.gmra.mrb[6].mxu0 %vm422_vm4, %v402_v48 }
 0x168   : > { %v1297_v54 = vpop.f32.mrb[0].mxu0 }
 0x169   : > { %v1772_v55 = vadd.f32 %v1297_v54, %v1200_v53  ;;  %v513_v56 = vpop.f32.mrb[1].mxu0 }
 0x16a   : > { %v1774_v57 = vadd.f32 %v1200_v53, %v513_v56 }
 0x16b   : > { %v553_v59 = vmax.f32 %v1772_v55, 0.0 }
 0x16c   : > { %v552_v58 = vmax.f32 %v1774_v57, 0.0 }
 0x16e   : > { %1311 = vmatprep.mubr.msk.f32.mxu1 %vm569_vm5, %v552_v58 }
 0x16f   : > { %1312 = vmatmul.mubr.msk.f32.vlgmr.msra.gmra.mrb[0].mxu1 %vm569_vm5, %v553_v59 }
 0x170   : > { %v1300_v60 = vpop.f32.mrb[2].mxu0  ;;  %1370 = vmatpush3.bf16.msra.mxu1 %v1367_v18 }
 0x171   : > { %v1784_v61 = vadd.f32 %v1300_v60, %v1200_v53  ;;  %v523_v62 = vpop.f32.mrb[3].mxu0 }
 0x172   : > { %v1786_v63 = vadd.f32 %v1200_v53, %v523_v62 }
 0x173   : > { %v555_v1 = vmax.f32 %v1784_v61, 0.0 }
 0x174   : > { %v554_v0 = vmax.f32 %v1786_v63, 0.0 }
 0x176   : > { %1314 = vmatprep.mubr.msk.f32.mxu1 %vm569_vm5, %v554_v0 }
 0x177   : > { %1315 = vmatmul.mubr.msk.f32.gmra.mrb[2].mxu1 %vm569_vm5, %v555_v1 }
 0x178   : > { %v1303_v2 = vpop.f32.mrb[4].mxu0 }
 0x179   : > { %v1796_v3 = vadd.f32 %v1303_v2, %v1200_v53  ;;  %v533_v4 = vpop.f32.mrb[5].mxu0 }
 0x17a   : > { %v1798_v5 = vadd.f32 %v1200_v53, %v533_v4 }
 0x17b   : > { %v557_v7 = vmax.f32 %v1796_v3, 0.0 }
 0x17c   : > { %v556_v6 = vmax.f32 %v1798_v5, 0.0 }
 0x17e   : > { %1317 = vmatprep.mubr.msk.f32.mxu1 %vm569_vm5, %v556_v6 }
 0x17f   : > { %1318 = vmatmul.mubr.msk.f32.gmra.mrb[4].mxu1 %vm569_vm5, %v557_v7 }
 0x180   : > { %v1306_v8 = vpop.f32.mrb[6].mxu0 }
 0x181   : > { %v1808_v9 = vadd.f32 %v1306_v8, %v1200_v53  ;;  %v543_v10 = vpop.f32.mrb[7].mxu0 }
 0x182   : > { %v1810_v12 = vadd.f32 %v1200_v53, %v543_v10 }
 0x183   : > { %v559_v15 = vmax.f32 %v1808_v9, 0.0 }
 0x184   : > { %v558_v14 = vmax.f32 %v1810_v12, 0.0 }
 0x186   : > { %1320 = vmatprep.mubr.msk.f32.mxu1 %vm569_vm5, %v558_v14 }
 0x187   : > { %1321 = vmatmul.mubr.msk.f32.gmra.mrb[6].mxu1 %vm569_vm5, %v559_v15 }
 0x242   : > { %v1313_v20 = vpop.f32.mrb[0].mxu1 }
 0x243   : > { %v666_v21 = vadd.f32 %v1313_v20, %v1209_v19  ;;  %v660_v22 = vpop.f32.mrb[1].mxu1 }
 0x244   : > { %v661_v23 = vadd.f32 %v1209_v19, %v660_v22 }
 0x246   : > { %1415 = vtanh.f32 %v661_v23 }
 0x247   : > { %1417 = vtanh.f32 %v666_v21 }
 0x24a   : > { %v1316_v24 = vpop.f32.mrb[2].mxu1 }
 0x24b   : > { %v676_v27 = vadd.f32 %v1316_v24, %v1209_v19  ;;  %v670_v28 = vpop.f32.mrb[3].mxu1 }
 0x24c   : > { %v671_v29 = vadd.f32 %v1209_v19, %v670_v28 }
 0x24e   : > { %1419 = vtanh.f32 %v671_v29 }
 0x24f   : > { %1421 = vtanh.f32 %v676_v27 }
 0x250   : > { %v1416_v30 = vpop.eup %1415 }
 0x251   : > { %v1418_v31 = vpop.eup %1417  ;;  %1327 = vmatprep.mubr.msk.f32.mxu1 %vm569_vm5, %v1416_v30 }
 0x252   : > { %v1319_v32 = vpop.f32.mrb[4].mxu1  ;;  %1328 = vmatmul.mubr.msk.f32.vlgmr.msra.gmra.mrb[8].mxu1 %vm569_vm5, %v1418_v31 }
 0x253   : > { %v686_v11 = vadd.f32 %v1319_v32, %v1209_v19  ;;  %v680_v33 = vpop.f32.mrb[5].mxu1 }
 0x254   : > { %v681_v34 = vadd.f32 %v1209_v19, %v680_v33 }
 0x256   : > { %1423 = vtanh.f32 %v681_v34 }
 0x257   : > { %1425 = vtanh.f32 %v686_v11 }
 0x258   : > { %v1420_v35 = vpop.eup %1419 }
 0x259   : > { %v1422_v36 = vpop.eup %1421  ;;  %1330 = vmatprep.mubr.msk.f32.mxu1 %vm569_vm5, %v1420_v35 }
 0x25a   : > { %v1322_v13 = vpop.f32.mrb[6].mxu1  ;;  %1331 = vmatmul.mubr.msk.f32.gmra.mrb[10].mxu1 %vm569_vm5, %v1422_v36 }
 0x25b   : > { %v696_v37 = vadd.f32 %v1322_v13, %v1209_v19  ;;  %v690_v38 = vpop.f32.mrb[7].mxu1 }
 0x25c   : > { %v691_v25 = vadd.f32 %v1209_v19, %v690_v38 }
 0x25e   : > { %1427 = vtanh.f32 %v691_v25 }
 0x25f   : > { %1429 = vtanh.f32 %v696_v37 }
 0x260   : > { %v1424_v39 = vpop.eup %1423 }
 0x261   : > { %v1426_v26 = vpop.eup %1425  ;;  %1333 = vmatprep.mubr.msk.f32.mxu1 %vm569_vm5, %v1424_v39 }
 0x262   : > { %1334 = vmatmul.mubr.msk.f32.gmra.mrb[12].mxu1 %vm569_vm5, %v1426_v26 }
 0x268   : > { %v1428_v40 = vpop.eup %1427 }
 0x269   : > { %v1430_v41 = vpop.eup %1429  ;;  %1336 = vmatprep.mubr.msk.f32.mxu1 %vm569_vm5, %v1428_v40 }
 0x26a   : > { %1337 = vmatmul.mubr.msk.f32.gmra.mrb[14].mxu1 %vm569_vm5, %v1430_v41 }
 0x325   : > { %v1329_v43 = vpop.f32.mrb[8].mxu1 }
 0x326   : > { %v846_v44 = vsel %vm838_vm6, %v1329_v43, -inf  ;;  %v799_v45 = vpop.f32.mrb[9].mxu1 }
 0x327   : > { %v847_v46 = vrot.slane %v846_v44, 4  ;;  %v839_v47 = vsel %vm838_vm6, %v799_v45, -inf }
 0x328   : > { %v840_v48 = vrot.slane %v839_v47, 4 }
 0x329   : > { %v848_v49 = vmax.f32 %v846_v44, %v847_v46 }
 0x32a   : > { %v841_v50 = vmax.f32 %v839_v47, %v840_v48 }
 0x32b   : > { %v849_v51 = vrot.slane %v848_v49, 2 }
 0x32c   : > { %v842_v52 = vrot.slane %v841_v50, 2 }
 0x32d   : > { %v850_v53 = vmax.f32 %v848_v49, %v849_v51  ;;  %v1332_v54 = vpop.f32.mrb[10].mxu1 }
 0x32e   : > { %v843_v56 = vmax.f32 %v841_v50, %v842_v52  ;;  %v860_v60 = vsel %vm838_vm6, %v1332_v54, -inf  ;;  %v809_v62 = vpop.f32.mrb[11].mxu1 }
 0x32f   : > { %v851_v2 = vrot.slane %v850_v53, 1  ;;  %v861_v4 = vrot.slane %v860_v60, 4  ;;  %v853_v8 = vsel %vm838_vm6, %v809_v62, -inf }
 0x330   : > { %v844_v10 = vrot.slane %v843_v56, 1  ;;  %v854_v16 = vrot.slane %v853_v8, 4 }
 0x331   : > { %v852_v17 = vmax.f32 %v850_v53, %v851_v2  ;;  %v862_v18 = vmax.f32 %v860_v60, %v861_v4 }
 0x332   : > { %v845_v19 = vmax.f32 %v843_v56, %v844_v10  ;;  %v855_v20 = vmax.f32 %v853_v8, %v854_v16 }
 0x333   : > { %v896_v21 = vsub.f32 %v1329_v43, %v852_v17  ;;  %v863_v22 = vrot.slane %v862_v18, 2 }
 0x334   : > { %v895_v23 = vsub.f32 %v799_v45, %v845_v19  ;;  %v856_v24 = vrot.slane %v855_v20, 2 }
 0x335   : > { %v905_v27 = vmul.f32 1.442695, %v896_v21  ;;  %v864_v28 = vmax.f32 %v862_v18, %v863_v22  ;;  %v1335_v29 = vpop.f32.mrb[12].mxu1 }
 0x336   : > { %v903_v30 = vmul.f32 1.442695, %v895_v23  ;;  %v857_v31 = vmax.f32 %v855_v20, %v856_v24  ;;  %v874_v32 = vsel %vm838_vm6, %v1335_v29, -inf  ;;  %v819_v11 = vpop.f32.mrb[13].mxu1 }
 0x337   : > { %1431 = vpow2.f32 %v905_v27  ;;  %v865_v33 = vrot.slane %v864_v28, 1  ;;  %v875_v34 = vrot.slane %v874_v32, 4  ;;  %v867_v35 = vsel %vm838_vm6, %v819_v11, -inf }
 0x338   : > { %1433 = vpow2.f32 %v903_v30  ;;  %v858_v36 = vrot.slane %v857_v31, 1  ;;  %v868_v13 = vrot.slane %v867_v35, 4 }
 0x339   : > { %v866_v37 = vmax.f32 %v864_v28, %v865_v33  ;;  %v876_v38 = vmax.f32 %v874_v32, %v875_v34 }
 0x33a   : > { %v859_v25 = vmax.f32 %v857_v31, %v858_v36  ;;  %v869_v39 = vmax.f32 %v867_v35, %v868_v13 }
 0x33b   : > { %v898_v26 = vsub.f32 %v1332_v54, %v866_v37  ;;  %v877_v40 = vrot.slane %v876_v38, 2 }
 0x33c   : > { %v897_v41 = vsub.f32 %v809_v62, %v859_v25  ;;  %v870_v42 = vrot.slane %v869_v39, 2 }
 0x33d   : > { %v909_v43 = vmul.f32 1.442695, %v898_v26  ;;  %v878_v44 = vmax.f32 %v876_v38, %v877_v40  ;;  %v1338_v45 = vpop.f32.mrb[14].mxu1 }
 0x33e   : > { %v907_v46 = vmul.f32 1.442695, %v897_v41  ;;  %v871_v47 = vmax.f32 %v869_v39, %v870_v42  ;;  %v888_v48 = vsel %vm838_vm6, %v1338_v45, -inf  ;;  %v829_v49 = vpop.f32.mrb[15].mxu1 }
 0x33f   : > { %1435 = vpow2.f32 %v909_v43  ;;  %v879_v50 = vrot.slane %v878_v44, 1  ;;  %v889_v51 = vrot.slane %v888_v48, 4  ;;  %v881_v52 = vsel %vm838_vm6, %v829_v49, -inf }
 0x340   : > { %1437 = vpow2.f32 %v907_v46  ;;  %v872_v53 = vrot.slane %v871_v47, 1  ;;  %v882_v56 = vrot.slane %v881_v52, 4 }
 0x341   : > { %v1845_v54 = vpop.eup %1431  ;;  %v880_v60 = vmax.f32 %v878_v44, %v879_v50  ;;  %v890_v62 = vmax.f32 %v888_v48, %v889_v51 }
 0x342   : > { %v1847_v2 = vpop.eup %1433  ;;  %v926_v4 = vsel %vm838_vm6, %v1845_v54, 0.0  ;;  %v873_v8 = vmax.f32 %v871_v47, %v872_v53  ;;  %v883_v10 = vmax.f32 %v881_v52, %v882_v56 }
 0x343   : > { %v927_v16 = vrot.slane %v926_v4, 4  ;;  %v919_v17 = vsel %vm838_vm6, %v1847_v2, 0.0  ;;  %v900_v18 = vsub.f32 %v1335_v29, %v880_v60  ;;  %v891_v19 = vrot.slane %v890_v62, 2 }
 0x344   : > { %v920_v20 = vrot.slane %v919_v17, 4  ;;  %v899_v21 = vsub.f32 %v819_v11, %v873_v8  ;;  %v884_v22 = vrot.slane %v883_v10, 2 }
 0x345   : > { %v928_v23 = vadd.f32 %v927_v16, %v926_v4  ;;  %v913_v24 = vmul.f32 1.442695, %v900_v18  ;;  %v892_v27 = vmax.f32 %v890_v62, %v891_v19 }
 0x346   : > { %v921_v28 = vadd.f32 %v920_v20, %v919_v17  ;;  %v911_v30 = vmul.f32 1.442695, %v899_v21  ;;  %v885_v31 = vmax.f32 %v883_v10, %v884_v22 }
 0x347   : > { %v929_v32 = vrot.slane %v928_v23, 2  ;;  %1439 = vpow2.f32 %v913_v24  ;;  %v893_v33 = vrot.slane %v892_v27, 1 }
 0x348   : > { %v922_v34 = vrot.slane %v921_v28, 2  ;;  %1441 = vpow2.f32 %v911_v30  ;;  %v886_v35 = vrot.slane %v885_v31, 1 }
 0x349   : > { %v1853_v36 = vpop.eup %1435  ;;  %v930_v13 = vadd.f32 %v929_v32, %v928_v23  ;;  %v894_v29 = vmax.f32 %v892_v27, %v893_v33 }
 0x34a   : > { %v1855_v37 = vpop.eup %1437  ;;  %v923_v11 = vadd.f32 %v922_v34, %v921_v28  ;;  %v940_v38 = vsel %vm838_vm6, %v1853_v36, 0.0  ;;  %v887_v25 = vmax.f32 %v885_v31, %v886_v35 }
 0x34b   : > { %v941_v39 = vrot.slane %v940_v38, 4  ;;  %v933_v26 = vsel %vm838_vm6, %v1855_v37, 0.0  ;;  %v902_v40 = vsub.f32 %v1338_v45, %v894_v29  ;;  %v931_v41 = vrot.slane %v930_v13, 1 }
 0x34c   : > { %v934_v42 = vrot.slane %v933_v26, 4  ;;  %v901_v43 = vsub.f32 %v829_v49, %v887_v25  ;;  %v924_v44 = vrot.slane %v923_v11, 1 }
 0x34d   : > { %v942_v46 = vadd.f32 %v941_v39, %v940_v38  ;;  %v917_v47 = vmul.f32 1.442695, %v902_v40  ;;  %v932_v48 = vadd.f32 %v931_v41, %v930_v13 }
 0x34e   : > { %v935_v50 = vadd.f32 %v934_v42, %v933_v26  ;;  %v915_v51 = vmul.f32 1.442695, %v901_v43  ;;  %v925_v52 = vadd.f32 %v924_v44, %v923_v11 }
 0x34f   : > { %v943_v53 = vrot.slane %v942_v46, 2  ;;  %1443 = vpow2.f32 %v917_v47 }
 0x350   : > { %v936_v56 = vrot.slane %v935_v50, 2  ;;  %1445 = vpow2.f32 %v915_v51 }
 0x351   : > { %v1440_v60 = vpop.eup %1439  ;;  %v944_v62 = vadd.f32 %v943_v53, %v942_v46  ;;  %1447 = vrcp.f32 %v932_v48 }
 0x352   : > { %v1442_v4 = vpop.eup %1441  ;;  %v937_v8 = vadd.f32 %v936_v56, %v935_v50  ;;  %v954_v45 = vsel %vm838_vm6, %v1440_v60, 0.0  ;;  %1449 = vrcp.f32 %v925_v52 }
 0x353   : > { %v955_v49 = vrot.slane %v954_v45, 4  ;;  %v947_v10 = vsel %vm838_vm6, %v1442_v4, 0.0  ;;  %v945_v16 = vrot.slane %v944_v62, 1 }
 0x354   : > { %v948_v17 = vrot.slane %v947_v10, 4  ;;  %v938_v18 = vrot.slane %v937_v8, 1 }
 0x355   : > { %v956_v19 = vadd.f32 %v955_v49, %v954_v45  ;;  %v946_v20 = vadd.f32 %v945_v16, %v944_v62 }
 0x356   : > { %v949_v21 = vadd.f32 %v948_v17, %v947_v10  ;;  %v939_v22 = vadd.f32 %v938_v18, %v937_v8 }
 0x357   : > { %v957_v23 = vrot.slane %v956_v19, 2  ;;  %1451 = vrcp.f32 %v946_v20 }
 0x358   : > { %v950_v24 = vrot.slane %v949_v21, 2  ;;  %1453 = vrcp.f32 %v939_v22 }
 0x359   : > { %v1444_v27 = vpop.eup %1443  ;;  %v958_v28 = vadd.f32 %v957_v23, %v956_v19 }
 0x35a   : > { %v1446_v30 = vpop.eup %1445  ;;  %v951_v31 = vadd.f32 %v950_v24, %v949_v21  ;;  %v968_v32 = vsel %vm838_vm6, %v1444_v27, 0.0 }
 0x35b   : > { %v1448_v33 = vpop.eup %1447  ;;  %v969_v34 = vrot.slane %v968_v32, 4  ;;  %v961_v35 = vsel %vm838_vm6, %v1446_v30, 0.0  ;;  %v959_v13 = vrot.slane %v958_v28, 1 }
 0x35c   : > { %v1450_v29 = vpop.eup %1449  ;;  %v962_v11 = vrot.slane %v961_v35, 4  ;;  %v984_v38 = vmul.f32 %v1448_v33, %v1845_v54  ;;  %v952_v25 = vrot.slane %v951_v31, 1 }
 0x35d   : > { %v970_v39 = vadd.f32 %v969_v34, %v968_v32  ;;  %v983_v26 = vmul.f32 %v1450_v29, %v1847_v2  ;;  %v960_v40 = vadd.f32 %v959_v13, %v958_v28 }
 0x35e   : > { %v963_v41 = vadd.f32 %v962_v11, %v961_v35  ;;  %998 = vperm.xlu1 %1413, %v984_v38   ;;  %v953_v42 = vadd.f32 %v952_v25, %v951_v31 }
 0x35f   : > { %v971_v43 = vrot.slane %v970_v39, 2  ;;  %993 = vperm.xlu0 %1414, %v983_v26   ;;  %1455 = vrcp.f32 %v960_v40 }
 0x360   : > { %v964_v44 = vrot.slane %v963_v41, 2  ;;  %1457 = vrcp.f32 %v953_v42 }
 0x361   : > { %v1452_v46 = vpop.eup %1451  ;;  %v972_v47 = vadd.f32 %v971_v43, %v970_v39 }
 0x362   : > { %v1454_v48 = vpop.eup %1453  ;;  %v965_v50 = vadd.f32 %v964_v44, %v963_v41  ;;  %v986_v51 = vmul.f32 %v1452_v46, %v1853_v36 }
 0x363   : > { %v985_v54 = vmul.f32 %v1454_v48, %v1855_v37  ;;  %v973_v52 = vrot.slane %v972_v47, 1 }
 0x364   : > { %1008 = vperm.xlu0 %1414, %v986_v51   ;;  %v966_v2 = vrot.slane %v965_v50, 1 }
 0x365   : > { %1003 = vperm.xlu1 %1413, %v985_v54   ;;  %v974_v53 = vadd.f32 %v973_v52, %v972_v47 }
 0x366   : > { %v967_v56 = vadd.f32 %v966_v2, %v965_v50 }
 0x367   : > { %1459 = vrcp.f32 %v974_v53 }
 0x368   : > { %1461 = vrcp.f32 %v967_v56 }
 0x369   : > { %v1456_v62 = vpop.eup %1455 }
 0x36a   : > { %v1458_v8 = vpop.eup %1457  ;;  %v988_v45 = vmul.f32 %v1456_v62, %v1440_v60 }
 0x36b   : > { %v987_v49 = vmul.f32 %v1458_v8, %v1442_v4 }
 0x36c   : > { %1018 = vperm.xlu0 %1414, %v988_v45  }
 0x36d   : > { %1013 = vperm.xlu1 %1413, %v987_v49  }
 0x371   : > { %v1460_v10 = vpop.eup %1459 }
 0x372   : > { %v1462_v16 = vpop.eup %1461  ;;  %v990_v17 = vmul.f32 %v1460_v10, %v1444_v27 }
 0x373   : > { %v989_v36 = vmul.f32 %v1462_v16, %v1446_v30 }
 0x374   : > { %1028 = vperm.xlu0 %1414, %v990_v17  }
 0x375   : > { %1023 = vperm.xlu1 %1413, %v989_v36  }
 0x3dd   : > { %v999_v37 = vpop.permute.xlu1 %998 }
 0x3de   : > { %v1032_v18 = vmul.f32 %v999_v37, %v553_v59  ;;  %v994_v19 = vpop.permute.xlu0 %993 }
 0x3df   : > { %v1031_v20 = vmul.f32 %v994_v19, %v552_v58 }
 0x3e0   : > { %v1046_v21 = vsel %vm569_vm5, %v1032_v18, 0.0 }
 0x3e1   : > { %v1039_v60 = vsel %vm569_vm5, %v1031_v20, 0.0  ;;  %v1047_v4 = vrot.slane %v1046_v21, 4 }
 0x3e2   : > { %v1040_v22 = vrot.slane %v1039_v60, 4 }
 0x3e3   : > { %v1009_v23 = vpop.permute.xlu0 %1008  ;;  %v1048_v59 = vadd.f32 %v1047_v4, %v1046_v21 }
 0x3e4   : > { %v1034_v24 = vmul.f32 %v1009_v23, %v555_v1  ;;  %v1004_v27 = vpop.permute.xlu1 %1003  ;;  %v1041_v30 = vadd.f32 %v1040_v22, %v1039_v60 }
 0x3e5   : > { %v1033_v28 = vmul.f32 %v1004_v27, %v554_v0  ;;  %v1049_v33 = vrot.slane %v1048_v59, 2 }
 0x3e6   : > { %v1060_v55 = vsel %vm569_vm5, %v1034_v24, 0.0  ;;  %v1042_v34 = vrot.slane %v1041_v30, 2 }
 0x3e7   : > { %v1053_v57 = vsel %vm569_vm5, %v1033_v28, 0.0  ;;  %v1061_v31 = vrot.slane %v1060_v55, 4  ;;  %v1050_v11 = vadd.f32 %v1049_v33, %v1048_v59 }
 0x3e8   : > { %v1054_v58 = vrot.slane %v1053_v57, 4  ;;  %v1043_v38 = vadd.f32 %v1042_v34, %v1041_v30 }
 0x3e9   : > { %v1062_v29 = vadd.f32 %v1061_v31, %v1060_v55  ;;  %v1051_v44 = vrot.slane %v1050_v11, 1 }
 0x3ea   : > { %v1055_v32 = vadd.f32 %v1054_v58, %v1053_v57  ;;  %v1044_v3 = vrot.slane %v1043_v38, 1 }
 0x3eb   : > { %v1019_v35 = vpop.permute.xlu0 %1018  ;;  %v1063_v41 = vrot.slane %v1062_v29, 2  ;;  %v1052_v2 = vadd.f32 %v1051_v44, %v1050_v11 }
 0x3ec   : > { %v1056_v13 = vrot.slane %v1055_v32, 2  ;;  %v1036_v61 = vmul.f32 %v1019_v35, %v557_v7  ;;  %v1014_v1 = vpop.permute.xlu1 %1013  ;;  %v1045_v53 = vadd.f32 %v1044_v3, %v1043_v38 }
 0x3ed   : > { %v1035_v63 = vmul.f32 %v1014_v1, %v556_v6  ;;  %v1064_v48 = vadd.f32 %v1063_v41, %v1062_v29 }
 0x3ee   : > { %v1074_v0 = vsel %vm569_vm5, %v1036_v61, 0.0  ;;  %v1057_v26 = vadd.f32 %v1056_v13, %v1055_v32 }
 0x3ef   : > { %v1075_v25 = vrot.slane %v1074_v0, 4  ;;  %v1067_v39 = vsel %vm569_vm5, %v1035_v63, 0.0 }
 0x3f0   : > { %v1068_v40 = vrot.slane %v1067_v39, 4  ;;  %v1058_v46 = vrot.slane %v1057_v26, 1 }
 0x3f1   : > { %v1076_v42 = vadd.f32 %v1075_v25, %v1074_v0 }
 0x3f2   : > { %v1069_v43 = vadd.f32 %v1068_v40, %v1067_v39  ;;  %v1059_v8 = vadd.f32 %v1058_v46, %v1057_v26 }
 0x3f3   : > { %v1029_v7 = vpop.permute.xlu0 %1028  ;;  %v1077_v50 = vrot.slane %v1076_v42, 2 }
 0x3f4   : > { %v1070_v47 = vrot.slane %v1069_v43, 2  ;;  %v1038_v5 = vmul.f32 %v1029_v7, %v559_v15  ;;  %v1024_v6 = vpop.permute.xlu1 %1023  ;;  %v1065_v15 = vrot.slane %v1064_v48, 1 }
 0x3f5   : > { %v1037_v51 = vmul.f32 %v1024_v6, %v558_v14  ;;  %v1078_v49 = vadd.f32 %v1077_v50, %v1076_v42  ;;  %v1104_v14 = vsel %vm1103_vm7, %v1052_v2, %v1045_v53 }
 0x3f6   : > { %v1071_v54 = vadd.f32 %v1070_v47, %v1069_v43  ;;  %v1088_v52 = vsel %vm569_vm5, %v1038_v5, 0.0  ;;  %v1106_v17 = vsel %vm1105_vm8, %v1059_v8, %v1104_v14  ;;  %v1066_v18 = vadd.f32 %v1065_v15, %v1064_v48 }
 0x3f7   : > { %v1089_v56 = vrot.slane %v1088_v52, 4  ;;  %v1081_v62 = vsel %vm569_vm5, %v1037_v51, 0.0  ;;  %v1079_v19 = vrot.slane %v1078_v49, 1 }
 0x3f8   : > { %v1072_v9 = vrot.slane %v1071_v54, 1  ;;  %v1082_v45 = vrot.slane %v1081_v62, 4  ;;  %v1108_v60 = vsel %vm1107_vm9, %v1066_v18, %v1106_v17 }
 0x3f9   : > { %v1090_v10 = vadd.f32 %v1089_v56, %v1088_v52  ;;  %v1080_v24 = vadd.f32 %v1079_v19, %v1078_v49 }
 0x3fa   : > { %v1083_v12 = vadd.f32 %v1082_v45, %v1081_v62  ;;  %v1073_v36 = vadd.f32 %v1072_v9, %v1071_v54 }
 0x3fb   : > { %v1091_v16 = vrot.slane %v1090_v10, 2 }
 0x3fc   : > { %v1084_v37 = vrot.slane %v1083_v12, 2  ;;  %v1110_v22 = vsel %vm1109_vm10, %v1073_v36, %v1108_v60 }
 0x3fd   : > { %v1092_v20 = vadd.f32 %v1091_v16, %v1090_v10  ;;  %v1112_v55 = vsel %vm1111_vm11, %v1080_v24, %v1110_v22 }
 0x3fe   : > { %v1085_v21 = vadd.f32 %v1084_v37, %v1083_v12 }
 0x3ff   : > { %v1093_v4 = vrot.slane %v1092_v20, 1 }
 0x400   : > { %v1086_v23 = vrot.slane %v1085_v21, 1 }
 0x401   : > { %v1094_v28 = vadd.f32 %v1093_v4, %v1092_v20 }
 0x402   : > { %v1087_v27 = vadd.f32 %v1086_v23, %v1085_v21 }
 0x404   : > { %v1114_v59 = vsel %vm1113_vm12, %v1087_v27, %v1112_v55 }
 0x405   : > { %v1116_v30 = vsel %vm1115_vm13, %v1094_v28, %v1114_v59 }
 0x406   : > { %1118 = vst.msk [vmem:[%s247_s11] sm:$0xff] %vm569_vm5, %v1116_v30 }
 0x407   : > { %1476 = shalt.err (!%p1473_p3)
}
 0x408   : > { %s1477_s19 = scalar_lea.hbm %s1900_s15, 128  ;;  %s1481_s28 = scalar_lea.hbm %s1951_s6, 256 }
 0x409   : > { %p1478_p4 = scmp.ne.s32.totalorder %s1900_s15, %s1477_s19  ;;  %p1482_p9 = scmp.lt.u32.totalorder %s1900_s15, %s1951_s6 }
 0x40a   : > { %p1483_p10 = scmp.lt.u32.totalorder %s1481_s28, %s1477_s19  ;;  %p1485_p12 = scmp.lt.u32.totalorder %s1477_s19, %s1900_s15 }
 0x40b   : > { %p1479_p7 = pnand %p1478_p4, %p1604_p5 }
 0x40c   : > { %p1484_p11 = por %p1483_p10, %p1482_p9 }
 0x40d   : > { %p1480_p8 = pneg %p1479_p7 }
 0x40e   : > { %p1486_p13 = por %p1485_p12, %p1484_p11 }
 0x410   : > { %p1487_p0 = pnand %p1486_p13, %p1480_p8 }
 0x412   : > { %1490 = shalt.err (!%p1487_p0)
}
 0x413   : > { %1371 = dma.vmem_to_hbm [thread:$0]  (%p1604_p5), %s1902_s12, 128, %s1900_s15, %s1120_s25  }
 0x414 PF: > { %p1377_p1 = scmp.ge.s32.totalorder %s1525_s24, 2  ;;  %s1145_s11 = sand.u32 1, %s1513_s21  }
 0x415   : > { %s1146_s13 = scalar_lea.sflag [#allocation3], %s1145_s11 }
 0x416   : > { %p1374_p2 = pnand %p1377_p1, %p1608_p6 }
 0x418   : > { %1508 = dma.done.wait (!%p1374_p2), %s1146_s13, 128  }
 0x419   : > { %1510 = vsyncadd (!%p1374_p2), %s1146_s13, 4294967168  ;;  %p16_p3 = scmp.ge.s32.totalorder %s1591_s27, 4   ;;  %s1954_s21 = smov %s1517_s22 }
 0x41a   : > { %s1955_s22 = smov %s1521_s23  ;;  %s1956_s23 = smov %s1602_s30 }
 0x41b   : > { %s1957_s24 = smov %s1591_s27  ;;  %18 = sbr.rel (!%p16_p3) target bundleno = 3 (0x3), region = 79 }
 0x422   :  { %1151 = vsyncpa [#allocation3], 1 }
 0x423   :  { %1153 = vsyncpa [#allocation3 + $0x1], 1 }

</bundles_post_ra>
